<compile_context>
chip_gen: v7x
topology: tpu7x:2x2x1
jax: 0.10.0
libtpu: 0.0.40
codegen_flags: <defaults>
</compile_context>

<pallas_src>
import math

import jax
import jax.numpy as jnp
from jax.experimental import pallas as pl
from jax.experimental.pallas import tpu as pltpu

# ----------------------------- model config ---------------------------------
N = 2          # batch
C_IN = 16      # inplanes
C_OUT = 16     # planes (== inplanes so the residual add is valid w/o downsample)
L = 32         # sequence length
K = 5          # kernel_size
PAD = K // 2   # Conv1d padding = kernel_size // 2
STRIDE = 1
EPS = 1e-5     # BatchNorm1d eps

# Flattened "batch stripe" geometry. Each batch owns LW lanes (2*PAD zero-pad
# lanes followed by its L data lanes); neighbouring stripes share zero padding,
# which is consistent because 2*PAD == K-1 for odd K.
LW = L + 2 * PAD        # lanes per batch stripe             (36)
RO = N * LW             # conv2 output lanes computed        (72)
RW = RO + (K - 1)       # conv1 "wide" output lanes          (76)
RF = RW + (K - 1)       # padded-input lanes                 (80)

# Static geometry guards (correctness, not perf): the shared-padding trick
# silently depends on these.
assert 2 * PAD == K - 1, "stripe trick needs odd kernel_size with PAD=(K-1)//2"
assert LW == L + 2 * PAD and RO == N * LW
assert RW == RO + (K - 1) and RF == RW + (K - 1)
assert C_IN == C_OUT, "residual without downsample requires inplanes == planes"
assert C_IN % 8 == 0, "im2col sublane concat must be 8-sublane aligned"


def _erf_approx(x):
    # Abramowitz & Stegun 7.1.26, max abs error ~1.5e-7 (plenty for f32 here).
    a1, a2, a3, a4, a5 = 0.254829592, -0.284496736, 1.421413741, -1.453152027, 1.061405429
    p = 0.3275911
    sgn = jnp.where(x >= 0.0, 1.0, -1.0)
    ax = jnp.abs(x)
    t = 1.0 / (1.0 + p * ax)
    poly = ((((a5 * t + a4) * t + a3) * t + a2) * t + a1) * t
    y = 1.0 - poly * jnp.exp(-ax * ax)
    return sgn * y


def _gelu(x):
    # PyTorch nn.GELU() default = exact erf GELU; erf via A&S approx
    # (only exp + arithmetic, guaranteed to lower on Mosaic).
    return 0.5 * x * (1.0 + _erf_approx(x * 0.7071067811865476))


# ------------------------------ Pallas kernel --------------------------------
def basic_block_kernel(x_ref, w1_ref, w2_ref, b1_ref, b2_ref, o_ref):
    # x_ref:  (N, C_IN, L)       native PyTorch layout, fully VMEM-resident
    # w1_ref: (C_OUT, K*C_IN)    conv1 weights, BN1 folded, im2col ordering
    # w2_ref: (C_OUT, K*C_OUT)   conv2 weights, BN0 folded, im2col ordering
    # b1_ref, b2_ref: (C_OUT, 1) folded BN biases
    # o_ref:  (N, C_OUT, L)

    # ---- assemble the striped, zero-padded, channels-major slab in-registers
    # xt[c, n*LW + 2*PAD + i] = x[n, c, i]; all other lanes are zero.
    lead_zeros = jnp.zeros((C_IN, 2 * PAD), jnp.float32)
    pieces = []
    for n in range(N):                                     # static, N = 2
        pieces.append(lead_zeros)
        pieces.append(x_ref[n])
    pieces.append(jnp.zeros((C_IN, RF - N * LW), jnp.float32))
    xt = jnp.concatenate(pieces, axis=1)                   # (16, 80), ~2 vregs

    # ---- conv1 (+ folded BN1): ONE MXU matmul over an in-register im2col ----
    # cols1[t*C_IN + c, r] = xt[c, r + t]; the K pieces are 16 sublanes each,
    # so the axis-0 concatenation is aligned to the (8,128) tiling.
    cols1 = jnp.concatenate([xt[:, t:t + RW] for t in range(K)], axis=0)   # (80, 76)
    h = jnp.dot(w1_ref[...], cols1, preferred_element_type=jnp.float32)    # (16, 76)
    h = _gelu(h + b1_ref[...])
    # TODO(synk): nn.Dropout(p=0.1) is active only in train mode; eval identity here.

    # ---- zero the lanes that act as conv2's zero padding / stripe junk ------
    r = jax.lax.broadcasted_iota(jnp.int32, (1, RW), 1)
    valid = (r >= PAD) & (r < PAD + L)
    for n in range(1, N):                                  # static
        valid = valid | ((r >= n * LW + PAD) & (r < n * LW + PAD + L))
    h = jnp.where(valid, h, 0.0)

    # ---- conv2 (+ folded BN0): second single-matmul im2col ------------------
    cols2 = jnp.concatenate([h[:, t:t + RO] for t in range(K)], axis=0)    # (80, 72)
    out = jnp.dot(w2_ref[...], cols2, preferred_element_type=jnp.float32)  # (16, 72)
    out = _gelu(out + b2_ref[...])
    # TODO(synk): second eval-mode dropout is identity as well.

    # ---- residual add + de-striped store directly in (N, C, L) layout -------
    for n in range(N):                                     # static
        o_ref[n] = (out[:, n * LW:n * LW + L] + x_ref[n]).astype(o_ref.dtype)


# --------------------------- one-time weight prep ----------------------------
def fold_bn_into_conv(w_oik, bn_tab):
    """Fold eval-mode BatchNorm into conv weights (im2col layout) + bias.

    Run ONCE (outside the jitted hot path).
      w_big[o, t*C_in + c] = w_oik[o, c, t] * scale[o]
      bias[o, 0]           = beta[o] - mean[o] * scale[o]
    """
    gamma, beta, mean, var = bn_tab[0], bn_tab[1], bn_tab[2], bn_tab[3]
    scale = gamma * jax.lax.rsqrt(var + EPS)                       # (C_out,)
    w_big = jnp.transpose(w_oik, (0, 2, 1)).reshape(w_oik.shape[0], -1)
    w_big = w_big * scale[:, None]                                 # (C_out, K*C_in)
    bias = (beta - mean * scale)[:, None]                          # (C_out, 1)
    return w_big, bias


# ------------------------------ jitted forward -------------------------------
@jax.jit
def basic_block_forward(x_ncl, w1_big, b1, w2_big, b2):
    """x_ncl: (N, C_IN, L); folded weights/biases precomputed.  -> (N, C_OUT, L).

    The jitted path is exactly one pallas_call: no pre/post layout ops.
    """
    return pl.pallas_call(
        basic_block_kernel,
        out_shape=jax.ShapeDtypeStruct((N, C_OUT, L), jnp.float32),
        in_specs=[pl.BlockSpec(memory_space=pltpu.MemorySpace.VMEM)] * 5,
        out_specs=pl.BlockSpec(memory_space=pltpu.MemorySpace.VMEM),
    )(x_ncl, w1_big, w2_big, b1, b2)


# ------------------------------ pure-JAX reference ---------------------------
def reference_forward(x_ncl, w1_oik, w2_oik, bn1_tab, bn0_tab):
    def conv1d(x, w):
        return jax.lax.conv_general_dilated(
            x, w, window_strides=(STRIDE,), padding=[(PAD, PAD)],
            dimension_numbers=("NCH", "OIH", "NCH"))

    def bn(x, tab):
        g, b, m, v = tab[0], tab[1], tab[2], tab[3]
        scale = g / jnp.sqrt(v + EPS)
        return x * scale[None, :, None] + (b - m * scale)[None, :, None]

    def gelu(x):
        return 0.5 * x * (1.0 + jax.scipy.special.erf(x / math.sqrt(2.0)))

    out = gelu(bn(conv1d(x_ncl, w1_oik), bn1_tab))
    out = gelu(bn(conv1d(out, w2_oik), bn0_tab))
    return out + x_ncl


# ----------------------------------- main -------------------------------------
if __name__ == "__main__":
    key = jax.random.PRNGKey(0)
    kx, kw1, kw2, kb1, kb0 = jax.random.split(key, 5)

    x = jax.random.normal(kx, (N, C_IN, L), jnp.float32)           # PyTorch NCL

    # Conv weights in PyTorch layout (Cout, Cin, K); bias=False.
    w1_oik = 0.1 * jax.random.normal(kw1, (C_OUT, C_IN, K), jnp.float32)
    w2_oik = 0.1 * jax.random.normal(kw2, (C_OUT, C_OUT, K), jnp.float32)

    def make_bn_table(k):
        kg, kb, km, kv = jax.random.split(k, 4)
        gamma = 1.0 + 0.1 * jax.random.normal(kg, (C_OUT,), jnp.float32)
        beta = 0.05 * jax.random.normal(kb, (C_OUT,), jnp.float32)
        mean = 0.02 * jax.random.normal(km, (C_OUT,), jnp.float32)
        var = 1.0 + 0.1 * jnp.abs(jax.random.normal(kv, (C_OUT,), jnp.float32))
        return jnp.stack([gamma, beta, mean, var], axis=0)          # (4, C_OUT)

    bn1_tab = make_bn_table(kb1)   # applied after conv1
    bn0_tab = make_bn_table(kb0)   # applied after conv2

    # One-time BN folding / im2col weight re-layout (hoisted out of the hot path).
    w1_big, b1 = fold_bn_into_conv(w1_oik, bn1_tab)   # (C_OUT, K*C_IN), (C_OUT, 1)
    w2_big, b2 = fold_bn_into_conv(w2_oik, bn0_tab)   # (C_OUT, K*C_OUT), (C_OUT, 1)

    out = basic_block_forward(x, w1_big, b1, w2_big, b2)
    out = jax.block_until_ready(out)

    ref = reference_forward(x, w1_oik, w2_oik, bn1_tab, bn0_tab)
    assert out.shape == (N, C_OUT, L)
    assert jnp.allclose(out, ref, atol=1e-3, rtol=1e-3), "mismatch vs JAX reference"

    print("KERNEL_OK")
</pallas_src>

<mosaic_0001>
module attributes {stable_mosaic.version = 11 : i64} {
  func.func @basic_block_kernel(%arg0: memref<2x16x32xf32, #tpu.memory_space<vmem>>, %arg1: memref<16x80xf32, #tpu.memory_space<vmem>>, %arg2: memref<16x80xf32, #tpu.memory_space<vmem>>, %arg3: memref<16x1xf32, #tpu.memory_space<vmem>>, %arg4: memref<16x1xf32, #tpu.memory_space<vmem>>, %arg5: memref<2x16x32xf32, #tpu.memory_space<vmem>>) attributes {dimension_semantics = [], scalar_prefetch = 0 : i64, scratch_operands = 0 : i64, tpu.core_type = #tpu.core_type<tc>} {
    %cst = arith.constant 0.000000e+00 : f32
    %0 = vector.broadcast %cst : f32 to vector<16x4xf32>
    %c0 = arith.constant 0 : index
    %c0_0 = arith.constant 0 : index
    %c0_1 = arith.constant 0 : index
    %1 = vector.load %arg0[%c0, %c0_0, %c0_1] : memref<2x16x32xf32, #tpu.memory_space<vmem>>, vector<1x16x32xf32>
    %2 = vector.shape_cast %1 : vector<1x16x32xf32> to vector<16x32xf32>
    %c1 = arith.constant 1 : index
    %c0_2 = arith.constant 0 : index
    %c0_3 = arith.constant 0 : index
    %3 = vector.load %arg0[%c1, %c0_2, %c0_3] : memref<2x16x32xf32, #tpu.memory_space<vmem>>, vector<1x16x32xf32>
    %4 = vector.shape_cast %3 : vector<1x16x32xf32> to vector<16x32xf32>
    %cst_4 = arith.constant 0.000000e+00 : f32
    %5 = vector.broadcast %cst_4 : f32 to vector<16x8xf32>
    %6 = tpu.concatenate %0, %2, %0, %4, %5 in 1 : vector<16x4xf32>, vector<16x32xf32>, vector<16x4xf32>, vector<16x32xf32>, vector<16x8xf32> -> vector<16x80xf32>
    %7 = vector.extract_strided_slice %6 {offsets = [0, 0], sizes = [16, 76], strides = [1, 1]} : vector<16x80xf32> to vector<16x76xf32>
    %8 = vector.extract_strided_slice %6 {offsets = [0, 1], sizes = [16, 76], strides = [1, 1]} : vector<16x80xf32> to vector<16x76xf32>
    %9 = vector.extract_strided_slice %6 {offsets = [0, 2], sizes = [16, 76], strides = [1, 1]} : vector<16x80xf32> to vector<16x76xf32>
    %10 = vector.extract_strided_slice %6 {offsets = [0, 3], sizes = [16, 76], strides = [1, 1]} : vector<16x80xf32> to vector<16x76xf32>
    %11 = vector.extract_strided_slice %6 {offsets = [0, 4], sizes = [16, 76], strides = [1, 1]} : vector<16x80xf32> to vector<16x76xf32>
    %12 = tpu.concatenate %7, %8, %9, %10, %11 in 0 : vector<16x76xf32>, vector<16x76xf32>, vector<16x76xf32>, vector<16x76xf32>, vector<16x76xf32> -> vector<80x76xf32>
    %c0_5 = arith.constant 0 : index
    %c0_6 = arith.constant 0 : index
    %13 = vector.load %arg1[%c0_5, %c0_6] : memref<16x80xf32, #tpu.memory_space<vmem>>, vector<16x80xf32>
    %cst_7 = arith.constant dense<0.000000e+00> : vector<16x76xf32>
    %14 = tpu.matmul %13, %12, %cst_7 {dimension_numbers = #tpu.dot_dimension_numbers<[1], [0], [0], [1], [0, 0, 1, 1], [], []>} : vector<16x80xf32>, vector<80x76xf32>, vector<16x76xf32> -> vector<16x76xf32>
    %c0_8 = arith.constant 0 : index
    %c0_9 = arith.constant 0 : index
    %15 = vector.load %arg3[%c0_8, %c0_9] : memref<16x1xf32, #tpu.memory_space<vmem>>, vector<16x1xf32>
    %16 = vector.broadcast %15 : vector<16x1xf32> to vector<16x76xf32>
    %17 = arith.addf %14, %16 : vector<16x76xf32>
    %cst_10 = arith.constant 5.000000e-01 : f32
    %18 = vector.broadcast %cst_10 : f32 to vector<16x76xf32>
    %19 = arith.mulf %18, %17 : vector<16x76xf32>
    %cst_11 = arith.constant 0.707106769 : f32
    %20 = vector.broadcast %cst_11 : f32 to vector<16x76xf32>
    %21 = arith.mulf %17, %20 : vector<16x76xf32>
    %cst_12 = arith.constant 0.000000e+00 : f32
    %22 = vector.broadcast %cst_12 : f32 to vector<16x76xf32>
    %23 = arith.cmpf oge, %21, %22 : vector<16x76xf32>
    %cst_13 = arith.constant 1.000000e+00 : f32
    %cst_14 = arith.constant -1.000000e+00 : f32
    %24 = vector.broadcast %cst_13 : f32 to vector<16x76xf32>
    %25 = vector.broadcast %cst_14 : f32 to vector<16x76xf32>
    %26 = arith.select %23, %24, %25 : vector<16x76xi1>, vector<16x76xf32>
    %27 = math.absf %21 : vector<16x76xf32>
    %cst_15 = arith.constant 0.327591091 : f32
    %28 = vector.broadcast %cst_15 : f32 to vector<16x76xf32>
    %29 = arith.mulf %28, %27 : vector<16x76xf32>
    %cst_16 = arith.constant 1.000000e+00 : f32
    %30 = vector.broadcast %cst_16 : f32 to vector<16x76xf32>
    %31 = arith.addf %30, %29 : vector<16x76xf32>
    %cst_17 = arith.constant 1.000000e+00 : f32
    %32 = vector.broadcast %cst_17 : f32 to vector<16x76xf32>
    %33 = arith.divf %32, %31 : vector<16x76xf32>
    %cst_18 = arith.constant 1.06140542 : f32
    %34 = vector.broadcast %cst_18 : f32 to vector<16x76xf32>
    %35 = arith.mulf %34, %33 : vector<16x76xf32>
    %cst_19 = arith.constant -1.45315206 : f32
    %36 = vector.broadcast %cst_19 : f32 to vector<16x76xf32>
    %37 = arith.addf %35, %36 : vector<16x76xf32>
    %38 = arith.mulf %37, %33 : vector<16x76xf32>
    %cst_20 = arith.constant 1.42141378 : f32
    %39 = vector.broadcast %cst_20 : f32 to vector<16x76xf32>
    %40 = arith.addf %38, %39 : vector<16x76xf32>
    %41 = arith.mulf %40, %33 : vector<16x76xf32>
    %cst_21 = arith.constant -0.284496725 : f32
    %42 = vector.broadcast %cst_21 : f32 to vector<16x76xf32>
    %43 = arith.addf %41, %42 : vector<16x76xf32>
    %44 = arith.mulf %43, %33 : vector<16x76xf32>
    %cst_22 = arith.constant 0.254829586 : f32
    %45 = vector.broadcast %cst_22 : f32 to vector<16x76xf32>
    %46 = arith.addf %44, %45 : vector<16x76xf32>
    %47 = arith.mulf %46, %33 : vector<16x76xf32>
    %cst_23 = arith.constant 0.000000e+00 : f32
    %48 = vector.broadcast %cst_23 : f32 to vector<16x76xf32>
    %49 = arith.subf %48, %27 : vector<16x76xf32>
    %50 = arith.mulf %49, %27 : vector<16x76xf32>
    %51 = math.exp %50 : vector<16x76xf32>
    %52 = arith.mulf %47, %51 : vector<16x76xf32>
    %cst_24 = arith.constant 1.000000e+00 : f32
    %53 = vector.broadcast %cst_24 : f32 to vector<16x76xf32>
    %54 = arith.subf %53, %52 : vector<16x76xf32>
    %55 = arith.mulf %26, %54 : vector<16x76xf32>
    %cst_25 = arith.constant 1.000000e+00 : f32
    %56 = vector.broadcast %cst_25 : f32 to vector<16x76xf32>
    %57 = arith.addf %56, %55 : vector<16x76xf32>
    %58 = arith.mulf %19, %57 : vector<16x76xf32>
    %59 = tpu.iota {dimensions = array<i32: 1>} : vector<1x76xi32>
    %c2_i32 = arith.constant 2 : i32
    %60 = vector.broadcast %c2_i32 : i32 to vector<1x76xi32>
    %61 = arith.cmpi sge, %59, %60 : vector<1x76xi32>
    %c34_i32 = arith.constant 34 : i32
    %62 = vector.broadcast %c34_i32 : i32 to vector<1x76xi32>
    %63 = arith.cmpi slt, %59, %62 : vector<1x76xi32>
    %64 = arith.andi %61, %63 : vector<1x76xi1>
    %c38_i32 = arith.constant 38 : i32
    %65 = vector.broadcast %c38_i32 : i32 to vector<1x76xi32>
    %66 = arith.cmpi sge, %59, %65 : vector<1x76xi32>
    %c70_i32 = arith.constant 70 : i32
    %67 = vector.broadcast %c70_i32 : i32 to vector<1x76xi32>
    %68 = arith.cmpi slt, %59, %67 : vector<1x76xi32>
    %69 = arith.andi %66, %68 : vector<1x76xi1>
    %70 = arith.ori %64, %69 : vector<1x76xi1>
    %cst_26 = arith.constant 0.000000e+00 : f32
    %71 = vector.shape_cast %70 : vector<1x76xi1> to vector<1x76xi1>
    %72 = vector.broadcast %71 : vector<1x76xi1> to vector<16x76xi1>
    %73 = vector.broadcast %cst_26 : f32 to vector<16x76xf32>
    %74 = arith.select %72, %58, %73 : vector<16x76xi1>, vector<16x76xf32>
    %75 = vector.extract_strided_slice %74 {offsets = [0, 0], sizes = [16, 72], strides = [1, 1]} : vector<16x76xf32> to vector<16x72xf32>
    %76 = vector.extract_strided_slice %74 {offsets = [0, 1], sizes = [16, 72], strides = [1, 1]} : vector<16x76xf32> to vector<16x72xf32>
    %77 = vector.extract_strided_slice %74 {offsets = [0, 2], sizes = [16, 72], strides = [1, 1]} : vector<16x76xf32> to vector<16x72xf32>
    %78 = vector.extract_strided_slice %74 {offsets = [0, 3], sizes = [16, 72], strides = [1, 1]} : vector<16x76xf32> to vector<16x72xf32>
    %79 = vector.extract_strided_slice %74 {offsets = [0, 4], sizes = [16, 72], strides = [1, 1]} : vector<16x76xf32> to vector<16x72xf32>
    %80 = tpu.concatenate %75, %76, %77, %78, %79 in 0 : vector<16x72xf32>, vector<16x72xf32>, vector<16x72xf32>, vector<16x72xf32>, vector<16x72xf32> -> vector<80x72xf32>
    %c0_27 = arith.constant 0 : index
    %c0_28 = arith.constant 0 : index
    %81 = vector.load %arg2[%c0_27, %c0_28] : memref<16x80xf32, #tpu.memory_space<vmem>>, vector<16x80xf32>
    %cst_29 = arith.constant dense<0.000000e+00> : vector<16x72xf32>
    %82 = tpu.matmul %81, %80, %cst_29 {dimension_numbers = #tpu.dot_dimension_numbers<[1], [0], [0], [1], [0, 0, 1, 1], [], []>} : vector<16x80xf32>, vector<80x72xf32>, vector<16x72xf32> -> vector<16x72xf32>
    %c0_30 = arith.constant 0 : index
    %c0_31 = arith.constant 0 : index
    %83 = vector.load %arg4[%c0_30, %c0_31] : memref<16x1xf32, #tpu.memory_space<vmem>>, vector<16x1xf32>
    %84 = vector.broadcast %83 : vector<16x1xf32> to vector<16x72xf32>
    %85 = arith.addf %82, %84 : vector<16x72xf32>
    %cst_32 = arith.constant 5.000000e-01 : f32
    %86 = vector.broadcast %cst_32 : f32 to vector<16x72xf32>
    %87 = arith.mulf %86, %85 : vector<16x72xf32>
    %cst_33 = arith.constant 0.707106769 : f32
    %88 = vector.broadcast %cst_33 : f32 to vector<16x72xf32>
    %89 = arith.mulf %85, %88 : vector<16x72xf32>
    %cst_34 = arith.constant 0.000000e+00 : f32
    %90 = vector.broadcast %cst_34 : f32 to vector<16x72xf32>
    %91 = arith.cmpf oge, %89, %90 : vector<16x72xf32>
    %cst_35 = arith.constant 1.000000e+00 : f32
    %cst_36 = arith.constant -1.000000e+00 : f32
    %92 = vector.broadcast %cst_35 : f32 to vector<16x72xf32>
    %93 = vector.broadcast %cst_36 : f32 to vector<16x72xf32>
    %94 = arith.select %91, %92, %93 : vector<16x72xi1>, vector<16x72xf32>
    %95 = math.absf %89 : vector<16x72xf32>
    %cst_37 = arith.constant 0.327591091 : f32
    %96 = vector.broadcast %cst_37 : f32 to vector<16x72xf32>
    %97 = arith.mulf %96, %95 : vector<16x72xf32>
    %cst_38 = arith.constant 1.000000e+00 : f32
    %98 = vector.broadcast %cst_38 : f32 to vector<16x72xf32>
    %99 = arith.addf %98, %97 : vector<16x72xf32>
    %cst_39 = arith.constant 1.000000e+00 : f32
    %100 = vector.broadcast %cst_39 : f32 to vector<16x72xf32>
    %101 = arith.divf %100, %99 : vector<16x72xf32>
    %cst_40 = arith.constant 1.06140542 : f32
    %102 = vector.broadcast %cst_40 : f32 to vector<16x72xf32>
    %103 = arith.mulf %102, %101 : vector<16x72xf32>
    %cst_41 = arith.constant -1.45315206 : f32
    %104 = vector.broadcast %cst_41 : f32 to vector<16x72xf32>
    %105 = arith.addf %103, %104 : vector<16x72xf32>
    %106 = arith.mulf %105, %101 : vector<16x72xf32>
    %cst_42 = arith.constant 1.42141378 : f32
    %107 = vector.broadcast %cst_42 : f32 to vector<16x72xf32>
    %108 = arith.addf %106, %107 : vector<16x72xf32>
    %109 = arith.mulf %108, %101 : vector<16x72xf32>
    %cst_43 = arith.constant -0.284496725 : f32
    %110 = vector.broadcast %cst_43 : f32 to vector<16x72xf32>
    %111 = arith.addf %109, %110 : vector<16x72xf32>
    %112 = arith.mulf %111, %101 : vector<16x72xf32>
    %cst_44 = arith.constant 0.254829586 : f32
    %113 = vector.broadcast %cst_44 : f32 to vector<16x72xf32>
    %114 = arith.addf %112, %113 : vector<16x72xf32>
    %115 = arith.mulf %114, %101 : vector<16x72xf32>
    %cst_45 = arith.constant 0.000000e+00 : f32
    %116 = vector.broadcast %cst_45 : f32 to vector<16x72xf32>
    %117 = arith.subf %116, %95 : vector<16x72xf32>
    %118 = arith.mulf %117, %95 : vector<16x72xf32>
    %119 = math.exp %118 : vector<16x72xf32>
    %120 = arith.mulf %115, %119 : vector<16x72xf32>
    %cst_46 = arith.constant 1.000000e+00 : f32
    %121 = vector.broadcast %cst_46 : f32 to vector<16x72xf32>
    %122 = arith.subf %121, %120 : vector<16x72xf32>
    %123 = arith.mulf %94, %122 : vector<16x72xf32>
    %cst_47 = arith.constant 1.000000e+00 : f32
    %124 = vector.broadcast %cst_47 : f32 to vector<16x72xf32>
    %125 = arith.addf %124, %123 : vector<16x72xf32>
    %126 = arith.mulf %87, %125 : vector<16x72xf32>
    %127 = vector.extract_strided_slice %126 {offsets = [0, 0], sizes = [16, 32], strides = [1, 1]} : vector<16x72xf32> to vector<16x32xf32>
    %c0_48 = arith.constant 0 : index
    %c0_49 = arith.constant 0 : index
    %c0_50 = arith.constant 0 : index
    %128 = vector.load %arg0[%c0_48, %c0_49, %c0_50] : memref<2x16x32xf32, #tpu.memory_space<vmem>>, vector<1x16x32xf32>
    %129 = vector.shape_cast %128 : vector<1x16x32xf32> to vector<16x32xf32>
    %130 = arith.addf %127, %129 : vector<16x32xf32>
    %c0_51 = arith.constant 0 : index
    %c0_52 = arith.constant 0 : index
    %c0_53 = arith.constant 0 : index
    %131 = vector.load %arg5[%c0_51, %c0_52, %c0_53] : memref<2x16x32xf32, #tpu.memory_space<vmem>>, vector<1x16x32xf32>
    %132 = vector.shape_cast %131 : vector<1x16x32xf32> to vector<16x32xf32>
    %133 = vector.shape_cast %130 : vector<16x32xf32> to vector<1x16x32xf32>
    tpu.vector_store %arg5[%c0_51, %c0_52, %c0_53], %133 {strides = array<i32>} : memref<2x16x32xf32, #tpu.memory_space<vmem>>, vector<1x16x32xf32>,
    %134 = vector.extract_strided_slice %126 {offsets = [0, 36], sizes = [16, 32], strides = [1, 1]} : vector<16x72xf32> to vector<16x32xf32>
    %c1_54 = arith.constant 1 : index
    %c0_55 = arith.constant 0 : index
    %c0_56 = arith.constant 0 : index
    %135 = vector.load %arg0[%c1_54, %c0_55, %c0_56] : memref<2x16x32xf32, #tpu.memory_space<vmem>>, vector<1x16x32xf32>
    %136 = vector.shape_cast %135 : vector<1x16x32xf32> to vector<16x32xf32>
    %137 = arith.addf %134, %136 : vector<16x32xf32>
    %c1_57 = arith.constant 1 : index
    %c0_58 = arith.constant 0 : index
    %c0_59 = arith.constant 0 : index
    %138 = vector.load %arg5[%c1_57, %c0_58, %c0_59] : memref<2x16x32xf32, #tpu.memory_space<vmem>>, vector<1x16x32xf32>
    %139 = vector.shape_cast %138 : vector<1x16x32xf32> to vector<16x32xf32>
    %140 = vector.shape_cast %137 : vector<16x32xf32> to vector<1x16x32xf32>
    tpu.vector_store %arg5[%c1_57, %c0_58, %c0_59], %140 {strides = array<i32>} : memref<2x16x32xf32, #tpu.memory_space<vmem>>, vector<1x16x32xf32>,
    return
  }
}

</mosaic_0001>

<bundles_post_ra>
// kernel: basic_block_forward.1
= control target key start
LH: loop header
LB: loop body
LE: loop exit
PB: predicated region body
PF: predicated region fallthrough
CT: control target
= control target key end

     0   :  { %10 = vsyncpa [#allocation3], 0  ;;  %s923_s0 = inlined_call_operand.vmem [shape: f32[2,16,32], index: 0, kind: input, shape index: {}]   ;;  %s924_s1 = inlined_call_operand.hbm [shape: f32[16,80], index: 1, kind: input, shape index: {}]   ;;  %s925_s2 = inlined_call_operand.hbm [shape: f32[16,80], index: 2, kind: input, shape index: {}]   ;;  %s926_s3 = inlined_call_operand.vmem [shape: f32[16,1], index: 3, kind: input, shape index: {}]   ;;  %s927_s4 = inlined_call_operand.vmem [shape: f32[16,1], index: 4, kind: input, shape index: {}]   ;;  %s928_s5 = inlined_call_operand.hbm [shape: f32[2,16,32], index: 5, kind: output, shape index: {}]  }
   0x1   :  { %11 = vsyncpa [#allocation6], 0 }
   0x2   :  { %12 = vsyncpa [#allocation4], 0  ;;  %s773_s18 = smov [#allocation2]   ;;  %s701_s22 = scalar_lea.hbm %s924_s1, 256 }
   0x3   :  { %s20_s19 = sshll.u32 %s773_s18, 4  ;;  %p702_p0 = scmp.ne.s32.totalorder %s924_s1, %s701_s22  ;;  %s21_s19 = int_to_ptr.vmem [resolvable:$true] %s20_s19 }
   0x4   :  { %p705_p1 = scmp.lt.u32.totalorder %s701_s22, %s924_s1 }
   0x6   :  { %p707_p2 = pnand %p705_p1, %p702_p0 }
   0x8   :  { %710 = shalt.err (!%p707_p2)
}
   0x9   :  { %s711_s27 = scalar_lea.vmem %s21_s19, 256  ;;  %p716_p4 = scmp.lt.s32.totalorder %s21_s19, %s21_s19 }
   0xa   :  { %p712_p3 = scmp.ne.s32.totalorder %s21_s19, %s711_s27  ;;  %p717_p5 = scmp.lt.s32.totalorder %s711_s27, %s711_s27 }
   0xc   :  { %p718_p6 = por %p717_p5, %p716_p4 }
   0xe   :  { %p719_p7 = pnand %p718_p6, %p712_p3 }
  0x10   :  { %722 = shalt.err (!%p719_p7)
}
  0x11   :  { %s774_s28 = smov 128   ;;  %s775_s29 = smov 8  }
  0x12   :  { %26 = dma.hbm_to_vmem [thread:$0]  %s924_s1, 256, %s21_s19, [#allocation3], %s774_s28, %s774_s28, %s775_s29  }
  0x13   :  { %s776_s7 = smov [#allocation5]   ;;  %s723_s11 = scalar_lea.hbm %s925_s2, 256 }
  0x14   :  { %s32_s8 = sshll.u32 %s776_s7, 4  ;;  %p724_p8 = scmp.ne.s32.totalorder %s925_s2, %s723_s11  ;;  %s33_s8 = int_to_ptr.vmem [resolvable:$true] %s32_s8 }
  0x15   :  { %p727_p9 = scmp.lt.u32.totalorder %s723_s11, %s925_s2 }
  0x17   :  { %p729_p10 = pnand %p727_p9, %p724_p8 }
  0x19   :  { %732 = shalt.err (!%p729_p10)
}
  0x1a   :  { %s733_s16 = scalar_lea.vmem %s33_s8, 256  ;;  %p738_p12 = scmp.lt.s32.totalorder %s33_s8, %s33_s8 }
  0x1b   :  { %p734_p11 = scmp.ne.s32.totalorder %s33_s8, %s733_s16  ;;  %p739_p13 = scmp.lt.s32.totalorder %s733_s16, %s733_s16 }
  0x1d   :  { %p740_p0 = por %p739_p13, %p738_p12 }
  0x1f   :  { %p741_p1 = pnand %p740_p0, %p734_p11 }
  0x21   :  { %744 = shalt.err (!%p741_p1)
}
  0x22   :  { %38 = dma.hbm_to_vmem [thread:$0]  %s925_s2, 256, %s33_s8, [#allocation6], %s774_s28, %s774_s28, %s775_s29  }
  0x23   :  { %767 = dma.done.wait [#allocation3], 256  }
  0x24   :  { %768 = vsyncadd [#allocation3], 4294967040 }
  0x25   :  { %769 = dma.done.wait [#allocation6], 256  }
  0x26   :  { %770 = vsyncadd [#allocation6], 4294967040  ;;  %v851_v0 = vld [vmem:[%s923_s0] sm:$0xff]  ;;  %v856_v1 = vld [vmem:[%s923_s0 + $0x8] sm:$0xff]  ;;  %s777_s25 = smov 4   ;;  %s778_s26 = smov 40  }
  0x27   :  { %v861_v2 = vld [vmem:[%s923_s0 + $0x10] sm:$0xff]  ;;  %v633_v3 = vpack.i.bf16 %v856_v1, %v851_v0  ;;  %v868_v4 = vld [vmem:[%s923_s0 + $0x18] sm:$0xff]  ;;  %vm70_vm0 = vcmask 31744   ;;  %vm73_vm1 = vcmask 293888   ;;  %vm76_vm2 = vcmask 326656   ;;  %s779_s0 = smov 125  }
  0x28   :  { %v638_v5 = vpack.i.bf16 %v868_v4, %v861_v2  ;;  %vm79_vm3 = vcmask 588800   ;;  %s780_s27 = smov 127   ;;  %s781_s30 = smov 126   ;;  %v108_v22 = vld [vmem:[#allocation2] sm:$0xff]  ;;  %vm122_vm5 = vcmask 654336   ;;  %v783_v24 = vmov 0  }
  0x29   :  { %634 = vrot.lane.b32.xlu0 %v633_v3, %s777_s25  ;;  %vm575_vm4 = vmpackc.low %vm79_vm3, %vm79_vm3  ;;  %548 = vmatprep.mubr.msk.f32.mxu0 %vm122_vm5, %v108_v22  ;;  %v110_v23 = vld [vmem:[%s926_s3] sm:$0xff]  ;;  %s782_s8 = smov 124   ;;  %v111_v25 = vld [vmem:[%s926_s3 + $0x8] sm:$0xff]  ;;  %s785_s14 = smov 36  }
  0x2a   :  { %663 = vset.pattern.permute.xlu0 %v783_v24  ;;  %664 = vset.pattern.permute.xlu1 %v783_v24  ;;  %v109_v42 = vld [vmem:[#allocation2 + $0x8] sm:$0xff]  ;;  %s787_s15 = smov [#allocation7]  }
  0x2b   :  { %s479_s16 = sshll.u32 %s787_s15, 4  ;;  %s480_s16 = int_to_ptr.vmem [resolvable:$true] %s479_s16 }
  0x2c   :  { %s745_s1 = scalar_lea.vmem %s480_s16, 512  ;;  %p750_p3 = scmp.lt.s32.totalorder %s480_s16, %s480_s16 }
  0x2d   :  { %639 = vrot.lane.b32.xlu0 %v638_v5, %s778_s26  ;;  %p746_p2 = scmp.ne.s32.totalorder %s480_s16, %s745_s1  ;;  %p751_p4 = scmp.lt.s32.totalorder %s745_s1, %s745_s1 }
  0x2f   :  { %p752_p5 = por %p751_p4, %p750_p3 }
  0x31   :  { %p753_p6 = pnand %p752_p5, %p746_p2 }
  0x9b   :  { %v635_v6 = vpop.permute.xlu0 %634 }
  0x9c   :  { %v637_v7 = vunpack.i.h.bf16 %v635_v6  ;;  %v636_v8 = vunpack.i.l.bf16 %v635_v6 }
  0x9e   :  { %v72_v9 = vsel %vm70_vm0, 0.0, %v637_v7  ;;  %v71_v10 = vsel %vm70_vm0, 0.0, %v636_v8 }
  0x9f   :  { %v640_v11 = vpop.permute.xlu0 %639  ;;  %v74_v14 = vsel %vm73_vm1, %v71_v10, 0.0  ;;  %v75_v15 = vsel %vm73_vm1, %v72_v9, 0.0 }
  0xa0   :  { %v642_v12 = vunpack.i.h.bf16 %v640_v11  ;;  %v641_v13 = vunpack.i.l.bf16 %v640_v11 }
  0xa2   :  { %v77_v16 = vsel %vm76_vm2, %v74_v14, %v641_v13  ;;  %v78_v17 = vsel %vm76_vm2, %v75_v15, %v642_v12  ;;  %vm448_vm2 = vcmask 261120  }
  0xa3   :  { %v80_v18 = vsel %vm79_vm3, %v77_v16, 0.0  ;;  %v81_v19 = vsel %vm79_vm3, %v78_v17, 0.0  ;;  %v574_v20 = vpack.c.bf16 %v78_v17, %v77_v16  ;;  %v258_v16 = vlaneseq }
  0xa4   :  { %v653_v21 = vpack.i.bf16 %v81_v19, %v80_v18 }
  0xa5   :  { %576 = vmatprep.subr.msk.bf16.mxu0 %vm575_vm4, %v574_v20 }
  0xa6   :  { %579 = vmatpush3.bf16.msk.msra.mxu0 %vm575_vm4, %v574_v20  ;;  %654 = vrot.lane.b32.xlu0 %v653_v21, %s779_s0 }
  0xa7   :  { %644 = vrot.lane.b32.xlu1 %v653_v21, %s780_s27 }
  0xaa   :  { %114 = vperm.xlu0 %663, %v110_v23  }
  0xab   :  { %649 = vrot.lane.b32.xlu1 %v653_v21, %s781_s30 }
  0xaf   :  { %659 = vrot.lane.b32.xlu1 %v653_v21, %s782_s8  ;;  %v259_v21 = vand.u32 127, %v258_v16 }
  0xb1   :  { %vm260_vm7 = vcmp.ge.s32.totalorder %v259_v21, 2  ;;  %vm261_vm8 = vcmp.lt.s32.totalorder %v259_v21, 34  ;;  %vm263_vm10 = vcmp.ge.s32.totalorder %v259_v21, 38  ;;  %vm264_vm11 = vcmp.lt.s32.totalorder %v259_v21, 70 }
  0xb2   :  { %vm262_vm12 = vmand %vm260_vm7, %vm261_vm8 }
  0xb3   :  { %119 = vperm.xlu1 %664, %v111_v25   ;;  %vm265_vm13 = vmand %vm263_vm10, %vm264_vm11 }
  0xb4   :  { %vm266_vm14 = vmor %vm262_vm12, %vm265_vm13 }
  0xb5   :  { %vm597_vm15 = vmpackc.low %vm266_vm14, %vm266_vm14 }
 0x118   :  { %v655_v29 = vpop.permute.xlu0 %654 }
 0x119   :  { %v645_v26 = vpop.permute.xlu1 %644  ;;  %v657_v32 = vunpack.i.h.bf16 %v655_v29  ;;  %v656_v33 = vunpack.i.l.bf16 %v655_v29 }
 0x11a   :  { %v647_v27 = vunpack.i.h.bf16 %v645_v26  ;;  %v646_v28 = vunpack.i.l.bf16 %v645_v26 }
 0x11b   :  { %v588_v38 = vpack.c.bf16 %v657_v32, %v656_v33 }
 0x11c   :  { %v580_v30 = vpack.c.bf16 %v647_v27, %v646_v28 }
 0x11d   :  { %v650_v31 = vpop.permute.xlu1 %649 }
 0x11e   :  { %v652_v34 = vunpack.i.h.bf16 %v650_v31  ;;  %v651_v35 = vunpack.i.l.bf16 %v650_v31  ;;  %581 = vmatprep.subr.bf16.mxu0 %v580_v30 }
 0x11f   :  { %583 = vmatpush3.bf16.msra.mxu0 %v580_v30  ;;  %v784_v30 = vmov -1.0  }
 0x120   :  { %v584_v36 = vpack.c.bf16 %v652_v34, %v651_v35 }
 0x121   :  { %v660_v37 = vpop.permute.xlu1 %659 }
 0x122   :  { %v662_v39 = vunpack.i.h.bf16 %v660_v37  ;;  %v661_v40 = vunpack.i.l.bf16 %v660_v37  ;;  %585 = vmatprep.subr.bf16.mxu0 %v584_v36 }
 0x123   :  { %587 = vmatpush3.bf16.msra.mxu0 %v584_v36 }
 0x124   :  { %589 = vmatprep.subr.bf16.mxu0 %v588_v38  ;;  %v592_v41 = vpack.c.bf16 %v662_v39, %v661_v40 }
 0x127   :  { %591 = vmatpush3.bf16.msra.mxu0 %v588_v38 }
 0x128   :  { %593 = vmatprep.subr.bf16.mxu0 %v592_v41 }
 0x129   :  { %v115_v44 = vpop.permute.xlu0 %114 }
 0x12b   :  { %595 = vmatpush3.bf16.msra.mxu0 %v592_v41 }
 0x12e   :  { %549 = vmatmul.mubr.msk.f32.vlgmr.msra.gmra.mrb[0].mxu0 %vm122_vm5, %v109_v42 }
 0x132   :  { %v120_v43 = vpop.permute.xlu1 %119 }
 0x201   :  { %v550_v45 = vpop.f32.mrb[0].mxu0 }
 0x202   :  { %v201_v46 = vadd.f32 %v550_v45, %v120_v43  ;;  %v195_v47 = vpop.f32.mrb[1].mxu0 }
 0x203   :  { %v196_v48 = vadd.f32 %v195_v47, %v115_v44  ;;  %v297_v47 = vld [vmem:[#allocation5] sm:$0xff] }
 0x204   :  { %v207_v49 = vmul.f32 0.70710677, %v201_v46  ;;  %v205_v36 = vmul.f32 0.5, %v201_v46  ;;  %v300_v46 = vld [vmem:[%s927_s4 + $0x8] sm:$0xff]  ;;  %571 = vmatprep.mubr.msk.f32.mxu1 %vm122_vm5, %v297_v47 }
 0x205   :  { %v206_v50 = vmul.f32 0.70710677, %v196_v48  ;;  %v204_v38 = vmul.f32 0.5, %v196_v48  ;;  %v299_v48 = vld [vmem:[%s927_s4] sm:$0xff]  ;;  %s786_s4 = smov 92  }
 0x206   :  { %v213_v51 = vand.u32 2147483647, %v207_v49  ;;  %vm209_vm6 = vcmp.ge.f32.partialorder %v207_v49, 0.0 }
 0x207   :  { %v212_v52 = vand.u32 2147483647, %v206_v50  ;;  %vm208_vm9 = vcmp.ge.f32.partialorder %v206_v50, 0.0  ;;  %v211_v31 = vsel %vm209_vm6, 1.0, %v784_v30 }
 0x208   :  { %v215_v53 = vmul.f32 0.3275911, %v213_v51  ;;  %v241_v57 = vsub.f32 0.0, %v213_v51  ;;  %v210_v33 = vsel %vm208_vm9, 1.0, %v784_v30 }
 0x209   :  { %v214_v54 = vmul.f32 0.3275911, %v212_v52  ;;  %v240_v58 = vsub.f32 0.0, %v212_v52 }
 0x20a   :  { %v217_v55 = vadd.f32 1.0, %v215_v53  ;;  %v243_v60 = vmul.f32 %v241_v57, %v213_v51 }
 0x20b   :  { %v216_v56 = vadd.f32 1.0, %v214_v54  ;;  %v242_v62 = vmul.f32 %v240_v58, %v212_v52 }
 0x20c   :  { %685 = vrcp.f32 %v217_v55  ;;  %v246_v6 = vmul.f32 1.442695, %v243_v60 }
 0x20d   :  { %687 = vrcp.f32 %v216_v56  ;;  %v244_v8 = vmul.f32 1.442695, %v242_v62 }
 0x20e   :  { %689 = vpow2.f32 %v246_v6 }
 0x20f   :  { %691 = vpow2.f32 %v244_v8 }
 0x216   :  { %v686_v59 = vpop.eup %685 }
 0x217   :  { %v688_v61 = vpop.eup %687  ;;  %v223_v63 = vmul.f32 1.0614054, %v686_v59 }
 0x218   :  { %v222_v3 = vmul.f32 1.0614054, %v688_v61  ;;  %v690_v24 = vpop.eup %689 }
 0x219   :  { %v225_v5 = vadd.f32 -1.4531521, %v223_v63  ;;  %v692_v26 = vpop.eup %691  ;;  %v298_v63 = vld [vmem:[#allocation5 + $0x8] sm:$0xff] }
 0x21a   :  { %v224_v7 = vadd.f32 -1.4531521, %v222_v3 }
 0x21b   :  { %v227_v9 = vmul.f32 %v686_v59, %v225_v5 }
 0x21c   :  { %v226_v10 = vmul.f32 %v688_v61, %v224_v7 }
 0x21d   :  { %v229_v11 = vadd.f32 1.4214138, %v227_v9 }
 0x21e   :  { %v228_v12 = vadd.f32 1.4214138, %v226_v10 }
 0x21f   :  { %v231_v13 = vmul.f32 %v686_v59, %v229_v11 }
 0x220   :  { %v230_v14 = vmul.f32 %v688_v61, %v228_v12 }
 0x221   :  { %v233_v15 = vadd.f32 -0.28449672, %v231_v13 }
 0x222   :  { %v232_v17 = vadd.f32 -0.28449672, %v230_v14 }
 0x223   :  { %v235_v18 = vmul.f32 %v686_v59, %v233_v15 }
 0x224   :  { %v234_v19 = vmul.f32 %v688_v61, %v232_v17 }
 0x225   :  { %v237_v20 = vadd.f32 0.2548296, %v235_v18 }
 0x226   :  { %v236_v22 = vadd.f32 0.2548296, %v234_v19 }
 0x227   :  { %v239_v23 = vmul.f32 %v686_v59, %v237_v20 }
 0x228   :  { %v238_v25 = vmul.f32 %v688_v61, %v236_v22 }
 0x229   :  { %v249_v27 = vmul.f32 %v690_v24, %v239_v23 }
 0x22a   :  { %v248_v28 = vmul.f32 %v692_v26, %v238_v25 }
 0x22b   :  { %v251_v29 = vsub.f32 1.0, %v249_v27 }
 0x22c   :  { %v250_v32 = vsub.f32 1.0, %v248_v28 }
 0x22d   :  { %v253_v34 = vmul.f32 %v251_v29, %v211_v31 }
 0x22e   :  { %v252_v35 = vmul.f32 %v250_v32, %v210_v33 }
 0x22f   :  { %v255_v37 = vadd.f32 1.0, %v253_v34 }
 0x230   :  { %v254_v39 = vadd.f32 1.0, %v252_v35 }
 0x231   :  { %v257_v40 = vmul.f32 %v255_v37, %v205_v36 }
 0x232   :  { %v256_v41 = vmul.f32 %v254_v39, %v204_v38 }
 0x233   :  { %v270_v42 = vsel %vm266_vm14, %v257_v40, 0.0 }
 0x234   :  { %v269_v43 = vsel %vm266_vm14, %v256_v41, 0.0  ;;  %v596_v44 = vpack.c.bf16 %v257_v40, %v256_v41 }
 0x235   :  { %v670_v45 = vpack.i.bf16 %v270_v42, %v269_v43 }
 0x236   :  { %598 = vmatprep.subr.msk.bf16.mxu1 %vm597_vm15, %v596_v44 }
 0x237   :  { %601 = vmatpush3.bf16.msk.msra.mxu1 %vm597_vm15, %v596_v44  ;;  %671 = vrot.lane.b32.xlu0 %v670_v45, %s781_s30 }
 0x238   :  { %666 = vrot.lane.b32.xlu1 %v670_v45, %s780_s27 }
 0x23b   :  { %681 = vrot.lane.b32.xlu0 %v670_v45, %s782_s8 }
 0x23c   :  { %676 = vrot.lane.b32.xlu1 %v670_v45, %s779_s0 }
 0x23f   :  { %308 = vperm.xlu0 %663, %v300_v46  }
 0x240   :  { %303 = vperm.xlu1 %664, %v299_v48  }
 0x243   :  { %457 = vrot.lane.b32.xlu0 %v868_v4, %s785_s14 }
 0x244   :  { %455 = vrot.lane.b32.xlu1 %v861_v2, %s785_s14 }
 0x2a9   :  { %v672_v49 = vpop.permute.xlu0 %671 }
 0x2aa   :  { %v667_v50 = vpop.permute.xlu1 %666  ;;  %v674_v51 = vunpack.i.h.bf16 %v672_v49  ;;  %v673_v52 = vunpack.i.l.bf16 %v672_v49 }
 0x2ab   :  { %v669_v53 = vunpack.i.h.bf16 %v667_v50  ;;  %v668_v54 = vunpack.i.l.bf16 %v667_v50 }
 0x2ac   :  { %v606_v57 = vpack.c.bf16 %v674_v51, %v673_v52 }
 0x2ad   :  { %v602_v55 = vpack.c.bf16 %v669_v53, %v668_v54  ;;  %v682_v60 = vpop.permute.xlu0 %681 }
 0x2ae   :  { %v677_v56 = vpop.permute.xlu1 %676  ;;  %v684_v61 = vunpack.i.h.bf16 %v682_v60  ;;  %v683_v62 = vunpack.i.l.bf16 %v682_v60 }
 0x2af   :  { %v679_v58 = vunpack.i.h.bf16 %v677_v56  ;;  %v678_v59 = vunpack.i.l.bf16 %v677_v56  ;;  %603 = vmatprep.subr.bf16.mxu1 %v602_v55 }
 0x2b0   :  { %605 = vmatpush3.bf16.msra.mxu1 %v602_v55  ;;  %v614_v2 = vpack.c.bf16 %v684_v61, %v683_v62 }
 0x2b1   :  { %607 = vmatprep.subr.bf16.mxu1 %v606_v57  ;;  %v610_v4 = vpack.c.bf16 %v679_v58, %v678_v59 }
 0x2b4   :  { %609 = vmatpush3.bf16.msra.mxu1 %v606_v57 }
 0x2b5   :  { %611 = vmatprep.subr.bf16.mxu1 %v610_v4 }
 0x2b8   :  { %613 = vmatpush3.bf16.msra.mxu1 %v610_v4 }
 0x2b9   :  { %615 = vmatprep.subr.bf16.mxu1 %v614_v2 }
 0x2bc   :  { %617 = vmatpush3.bf16.msra.mxu1 %v614_v2 }
 0x2be   :  { %v309_v3 = vpop.permute.xlu0 %308 }
 0x2bf   :  { %572 = vmatmul.mubr.msk.f32.vlgmr.msra.gmra.mrb[0].mxu1 %vm122_vm5, %v298_v63  ;;  %v304_v6 = vpop.permute.xlu1 %303 }
 0x2c2   :  { %v458_v58 = vpop.permute.xlu0 %457 }
 0x2c3   :  { %v456_v61 = vpop.permute.xlu1 %455 }
 0x392   :  { %v573_v5 = vpop.f32.mrb[0].mxu1 }
 0x393   :  { %v389_v7 = vadd.f32 %v573_v5, %v309_v3  ;;  %v383_v8 = vpop.f32.mrb[1].mxu1 }
 0x394   :  { %v384_v9 = vadd.f32 %v383_v8, %v304_v6 }
 0x395   :  { %v395_v10 = vmul.f32 0.70710677, %v389_v7  ;;  %v393_v55 = vmul.f32 0.5, %v389_v7 }
 0x396   :  { %v394_v11 = vmul.f32 0.70710677, %v384_v9  ;;  %v392_v57 = vmul.f32 0.5, %v384_v9 }
 0x397   :  { %v401_v12 = vand.u32 2147483647, %v395_v10  ;;  %vm397_vm0 = vcmp.ge.f32.partialorder %v395_v10, 0.0 }
 0x398   :  { %v400_v13 = vand.u32 2147483647, %v394_v11  ;;  %vm396_vm1 = vcmp.ge.f32.partialorder %v394_v11, 0.0  ;;  %v399_v50 = vsel %vm397_vm0, 1.0, %v784_v30 }
 0x399   :  { %v403_v14 = vmul.f32 0.3275911, %v401_v12  ;;  %v429_v18 = vsub.f32 0.0, %v401_v12  ;;  %v398_v52 = vsel %vm396_vm1, 1.0, %v784_v30 }
 0x39a   :  { %v402_v15 = vmul.f32 0.3275911, %v400_v13  ;;  %v428_v19 = vsub.f32 0.0, %v400_v13 }
 0x39b   :  { %v405_v16 = vadd.f32 1.0, %v403_v14  ;;  %v431_v21 = vmul.f32 %v429_v18, %v401_v12 }
 0x39c   :  { %v404_v17 = vadd.f32 1.0, %v402_v15  ;;  %v430_v23 = vmul.f32 %v428_v19, %v400_v13 }
 0x39d   :  { %693 = vrcp.f32 %v405_v16  ;;  %v434_v27 = vmul.f32 1.442695, %v431_v21 }
 0x39e   :  { %695 = vrcp.f32 %v404_v17  ;;  %v432_v29 = vmul.f32 1.442695, %v430_v23 }
 0x39f   :  { %697 = vpow2.f32 %v434_v27 }
 0x3a0   :  { %699 = vpow2.f32 %v432_v29 }
 0x3a7   :  { %v694_v20 = vpop.eup %693 }
 0x3a8   :  { %v696_v22 = vpop.eup %695  ;;  %v411_v24 = vmul.f32 1.0614054, %v694_v20 }
 0x3a9   :  { %v410_v25 = vmul.f32 1.0614054, %v696_v22  ;;  %v698_v44 = vpop.eup %697 }
 0x3aa   :  { %v413_v26 = vadd.f32 -1.4531521, %v411_v24  ;;  %v700_v46 = vpop.eup %699 }
 0x3ab   :  { %v412_v28 = vadd.f32 -1.4531521, %v410_v25 }
 0x3ac   :  { %v415_v31 = vmul.f32 %v694_v20, %v413_v26 }
 0x3ad   :  { %v414_v32 = vmul.f32 %v696_v22, %v412_v28 }
 0x3ae   :  { %v417_v33 = vadd.f32 1.4214138, %v415_v31 }
 0x3af   :  { %v416_v34 = vadd.f32 1.4214138, %v414_v32 }
 0x3b0   :  { %v419_v35 = vmul.f32 %v694_v20, %v417_v33 }
 0x3b1   :  { %v418_v36 = vmul.f32 %v696_v22, %v416_v34 }
 0x3b2   :  { %v421_v37 = vadd.f32 -0.28449672, %v419_v35 }
 0x3b3   :  { %v420_v38 = vadd.f32 -0.28449672, %v418_v36 }
 0x3b4   :  { %v423_v39 = vmul.f32 %v694_v20, %v421_v37 }
 0x3b5   :  { %v422_v40 = vmul.f32 %v696_v22, %v420_v38 }
 0x3b6   :  { %v425_v41 = vadd.f32 0.2548296, %v423_v39 }
 0x3b7   :  { %v424_v42 = vadd.f32 0.2548296, %v422_v40 }
 0x3b8   :  { %v427_v43 = vmul.f32 %v694_v20, %v425_v41 }
 0x3b9   :  { %v426_v45 = vmul.f32 %v696_v22, %v424_v42 }
 0x3ba   :  { %v437_v47 = vmul.f32 %v698_v44, %v427_v43 }
 0x3bb   :  { %v436_v48 = vmul.f32 %v700_v46, %v426_v45 }
 0x3bc   :  { %v439_v49 = vsub.f32 1.0, %v437_v47 }
 0x3bd   :  { %v438_v51 = vsub.f32 1.0, %v436_v48 }
 0x3be   :  { %v441_v53 = vmul.f32 %v439_v49, %v399_v50 }
 0x3bf   :  { %v440_v54 = vmul.f32 %v438_v51, %v398_v52 }
 0x3c0   :  { %v443_v56 = vadd.f32 1.0, %v441_v53 }
 0x3c1   :  { %v442_v59 = vadd.f32 1.0, %v440_v54 }
 0x3c2   :  { %v445_v60 = vmul.f32 %v443_v56, %v393_v55 }
 0x3c3   :  { %v444_v62 = vmul.f32 %v442_v59, %v392_v57 }
 0x3c4   :  { %v447_v4 = vadd.f32 %v445_v60, %v856_v1  ;;  %v462_v2 = vadd.f32 %v458_v58, %v445_v60 }
 0x3c5   :  { %v446_v63 = vadd.f32 %v444_v62, %v851_v0  ;;  %v461_v3 = vadd.f32 %v456_v61, %v444_v62 }
 0x3c6   :  { %467 = vrot.lane.b32.xlu0 %v462_v2, %s786_s4  ;;  %450 = vst.msk [vmem:[#allocation7 + $0x8] sm:$0xff] %vm448_vm2, %v447_v4 }
 0x3c7   :  { %465 = vrot.lane.b32.xlu1 %v461_v3, %s786_s4  ;;  %449 = vst.msk [vmem:[#allocation7] sm:$0xff] %vm448_vm2, %v446_v63 }
 0x438   :  { %v468_v30 = vpop.permute.xlu0 %467 }
 0x439   :  { %473 = vst.msk [vmem:[#allocation7 + $0x18] sm:$0xff] %vm448_vm2, %v468_v30  ;;  %v466_v5 = vpop.permute.xlu1 %465 }
 0x43a   :  { %472 = vst.msk [vmem:[#allocation7 + $0x10] sm:$0xff] %vm448_vm2, %v466_v5 }
 0x43b   :  { %756 = shalt.err (!%p753_p6)
}
 0x43c   :  { %s757_s19 = scalar_lea.hbm %s928_s5, 512 }
 0x43d   :  { %p758_p7 = scmp.ne.s32.totalorder %s928_s5, %s757_s19  ;;  %p761_p8 = scmp.lt.u32.totalorder %s757_s19, %s928_s5 }
 0x43f   :  { %p763_p9 = pnand %p761_p8, %p758_p7 }
 0x441   :  { %766 = shalt.err (!%p763_p9)
}
 0x442   :  { %485 = dma.vmem_to_hbm [thread:$0]  %s480_s16, 512, %s928_s5, [#allocation4], %s774_s28, %s774_s28, %s775_s29  }
 0x443   :  { %771 = dma.done.wait [#allocation4], 512  }
 0x444   :  { %772 = vsyncadd [#allocation4], 4294966784 }
 0x445   :  { %489 = vsyncpa [#allocation3], 1 }
 0x446   :  { %490 = vsyncpa [#allocation6], 1 }
 0x447   :  { %491 = vsyncpa [#allocation4], 1 }

</bundles_post_ra>
